<compile_context>
chip_gen: v6e
topology: v6e:2x2x1
jax: 0.10.0
libtpu: 0.0.40
codegen_flags: <defaults>
</compile_context>

<pallas_src>
import functools

import jax
import jax.numpy as jnp
from jax.experimental import pallas as pl
from jax.experimental.pallas import tpu as pltpu


def _round_up(x: int, m: int) -> int:
    return (x + m - 1) // m * m


def _block_selection_kernel(zc_ref, zb_ref, w1a_ref, w1b_ref, b1_ref, w2_ref,
                            b2_ref, out_ref):
    # Layer 1: two canonical (rows, K) @ (K, pack*H) MXU matmuls, f32 accumulation.
    # Operands rounded to bf16 (matches XLA default-precision matmul) -> 1 MXU pass.
    zc = zc_ref[...].astype(jnp.bfloat16)
    zb = zb_ref[...].astype(jnp.bfloat16)
    h = jnp.dot(zc, w1a_ref[...], preferred_element_type=jnp.float32)
    h = h + jnp.dot(zb, w1b_ref[...], preferred_element_type=jnp.float32)
    h = jnp.maximum(h + b1_ref[...], 0.0)        # bias + ReLU on the VPU (f32)
    # TODO(synk): dropout omitted (p=0.0 / eval semantics of the reference MLP).

    # Layer 2: block-diagonal (rows, pack*H) @ (pack*H, pack) -> per-row logits.
    logit = jnp.dot(h.astype(jnp.bfloat16), w2_ref[...],
                    preferred_element_type=jnp.float32) + b2_ref[...]
    out_ref[...] = jax.nn.sigmoid(logit).astype(out_ref.dtype)


@functools.partial(jax.jit, static_argnames=("tile_n", "core_parallel"))
def block_selection_forward(z_core, z_block, w1, b1, w2, b2, *,
                            tile_n=32768, core_parallel=False):
    """z_core: (N, F_core), z_block: (N, F_block), w1: (F_core+F_block, H),
    b1: (H,), w2: (H, 1), b2: (1,)  ->  probabilities (N,)"""
    n, f_core = z_core.shape
    n_b, f_block = z_block.shape
    assert n == n_b
    f_total = f_core + f_block
    hidden = w1.shape[1]
    assert w1.shape == (f_total, hidden)

    # Lane packing factor: put `pack` consecutive batch rows on the 128 lanes.
    if f_core == f_block and f_core <= 128 and 128 % f_core == 0:
        pack = 128 // f_core
    else:
        pack = 1  # correct (but less lane-dense) fallback layout

    n_rows = -(-n // pack)
    n_pad = n_rows * pack
    if n_pad != n:
        # Rare small tail (< pack rows) so the lane-packing reshape below stays a
        # pure metadata change in the common (divisible) case.
        pad = ((0, n_pad - n), (0, 0))
        z_core = jnp.pad(z_core, pad)
        z_block = jnp.pad(z_block, pad)

    # Free row-major reshapes (bitcast under jit): no extra HBM pass over Z.
    lane_c, lane_b = pack * f_core, pack * f_block
    zc = z_core.reshape(n_rows, lane_c)
    zb = z_block.reshape(n_rows, lane_b)

    # Tiny weights: block-diagonal packing so the packed matmul reproduces the
    # per-row MLP exactly; cast to bf16 once here (negligible bytes).
    eye = jnp.eye(pack, dtype=jnp.float32)
    w1a = jnp.kron(eye, w1[:f_core].astype(jnp.float32)).astype(jnp.bfloat16)
    w1b = jnp.kron(eye, w1[f_core:].astype(jnp.float32)).astype(jnp.bfloat16)
    b1p = jnp.tile(b1.astype(jnp.float32).reshape(1, hidden), (1, pack))
    w2p = jnp.kron(eye, w2.astype(jnp.float32)).astype(jnp.bfloat16)
    b2p = b2.reshape(1, 1).astype(jnp.float32)

    # Batch tiling: ~tile_n batch rows per grid step, bounded so the two
    # double-buffered Z streams stay within ~12 MiB of VMEM.
    row_bytes = 2 * 4 * (_round_up(lane_c, 128) + _round_up(lane_b, 128))
    rows_per_tile = max(8, min(tile_n // pack, (12 << 20) // row_bytes))
    rows_per_tile = _round_up(rows_per_tile, 8)
    if n_rows <= rows_per_tile:
        rows_per_tile = n_rows            # single block == full array (always legal)
    grid = (pl.cdiv(n_rows, rows_per_tile),)

    in_specs = [
        pl.BlockSpec((rows_per_tile, lane_c), lambda i: (i, 0)),       # Z_core tile
        pl.BlockSpec((rows_per_tile, lane_b), lambda i: (i, 0)),       # Z_block tile
        pl.BlockSpec((lane_c, pack * hidden), lambda i: (0, 0)),       # W1a (resident)
        pl.BlockSpec((lane_b, pack * hidden), lambda i: (0, 0)),       # W1b (resident)
        pl.BlockSpec((1, pack * hidden), lambda i: (0, 0)),            # b1
        pl.BlockSpec((pack * hidden, pack), lambda i: (0, 0)),         # W2 (resident)
        pl.BlockSpec((1, 1), lambda i: (0, 0)),                        # b2
    ]
    out_specs = pl.BlockSpec((rows_per_tile, pack), lambda i: (i, 0))

    cost = pl.CostEstimate(
        flops=2 * n_pad * f_total * hidden + 2 * n_pad * hidden,
        transcendentals=2 * n_pad,                      # sigmoid ~ exp + recip
        bytes_accessed=n_pad * f_total * 4 + n_pad * 4,
    )

    dims = (pltpu.CORE_PARALLEL,) if core_parallel else ("parallel",)
    out = pl.pallas_call(
        _block_selection_kernel,
        out_shape=jax.ShapeDtypeStruct((n_rows, pack), jnp.float32),
        grid=grid,
        in_specs=in_specs,
        out_specs=out_specs,
        compiler_params=pltpu.CompilerParams(
            dimension_semantics=dims,
            vmem_limit_bytes=48 * 1024 * 1024,
        ),
        cost_estimate=cost,
    )(zc, zb, w1a, w1b, b1p, w2p, b2p)

    return out.reshape(n_rows * pack)[:n]


def _reference(z_core, z_block, w1, b1, w2, b2):
    z = jnp.concatenate([z_core, z_block], axis=-1)
    h = jax.nn.relu(z @ w1 + b1)
    return jax.nn.sigmoid(h @ w2 + b2)[:, 0]


if __name__ == "__main__":
    # Small shapes consistent with the module: N=8, F_core=16, F_block=16, H=32.
    N, F_CORE, F_BLOCK, HIDDEN = 8, 16, 16, 32

    key = jax.random.PRNGKey(0)
    k1, k2, k3, k4, k5, k6, k7, k8 = jax.random.split(key, 8)

    z_core = jax.random.normal(k1, (N, F_CORE), dtype=jnp.float32)
    z_block = jax.random.normal(k2, (N, F_BLOCK), dtype=jnp.float32)

    # Deterministic synthetic parameters (not a checkpoint load).
    w1 = jax.random.normal(k3, (F_CORE + F_BLOCK, HIDDEN), dtype=jnp.float32) * 0.1
    b1 = jax.random.normal(k4, (HIDDEN,), dtype=jnp.float32) * 0.01
    w2 = jax.random.normal(k5, (HIDDEN, 1), dtype=jnp.float32) * 0.1
    b2 = jax.random.normal(k6, (1,), dtype=jnp.float32) * 0.01

    ref = _reference(z_core, z_block, w1, b1, w2, b2)
    probs = block_selection_forward(z_core, z_block, w1, b1, w2, b2)
    probs = jax.block_until_ready(probs)
    assert probs.shape == (N,)
    assert jnp.allclose(probs, ref, atol=2e-3, rtol=2e-3), (probs, ref)

    # Exercise the general path: N not a multiple of the pack factor and several
    # grid steps with a ragged last tile (pl.cdiv grid, no wrapper padding pass
    # beyond the <pack-row tail).
    N2 = 1001
    z_core2 = jax.random.normal(k7, (N2, F_CORE), dtype=jnp.float32)
    z_block2 = jax.random.normal(k8, (N2, F_BLOCK), dtype=jnp.float32)
    ref2 = _reference(z_core2, z_block2, w1, b1, w2, b2)
    probs2 = block_selection_forward(z_core2, z_block2, w1, b1, w2, b2, tile_n=256)
    probs2 = jax.block_until_ready(probs2)
    assert probs2.shape == (N2,)
    assert jnp.allclose(probs2, ref2, atol=2e-3, rtol=2e-3), (probs2, ref2)

    print("KERNEL_OK")
</pallas_src>

<mosaic_0001>
module attributes {stable_mosaic.version = 11 : i64} {
  func.func @_block_selection_kernel(%arg0: i32, %arg1: memref<1x128xf32, #tpu.memory_space<vmem>>, %arg2: memref<1x128xf32, #tpu.memory_space<vmem>>, %arg3: memref<128x256xbf16, #tpu.memory_space<vmem>>, %arg4: memref<128x256xbf16, #tpu.memory_space<vmem>>, %arg5: memref<1x256xf32, #tpu.memory_space<vmem>>, %arg6: memref<256x8xbf16, #tpu.memory_space<vmem>>, %arg7: memref<1x1xf32, #tpu.memory_space<vmem>>, %arg8: memref<1x8xf32, #tpu.memory_space<vmem>>) attributes {dimension_semantics = [#tpu.dimension_semantics<parallel>], iteration_bounds = array<i64: 1>, scalar_prefetch = 0 : i64, scratch_operands = 0 : i64, tpu.core_type = #tpu.core_type<tc>, window_params = [{transform_indices = @transform_0, window_bounds = array<i64: 1, 128>}, {transform_indices = @transform_1, window_bounds = array<i64: 1, 128>}, {pipeline_mode = #tpu.pipeline_mode<synchronous>, transform_indices = @transform_2, window_bounds = array<i64: 128, 256>}, {pipeline_mode = #tpu.pipeline_mode<synchronous>, transform_indices = @transform_3, window_bounds = array<i64: 128, 256>}, {pipeline_mode = #tpu.pipeline_mode<synchronous>, transform_indices = @transform_4, window_bounds = array<i64: 1, 256>}, {pipeline_mode = #tpu.pipeline_mode<synchronous>, transform_indices = @transform_5, window_bounds = array<i64: 256, 8>}, {pipeline_mode = #tpu.pipeline_mode<synchronous>, transform_indices = @transform_6, window_bounds = array<i64: 1, 1>}, {transform_indices = @transform_7, window_bounds = array<i64: 1, 8>}]} {
    %c0 = arith.constant 0 : index
    %c0_0 = arith.constant 0 : index
    %0 = vector.load %arg1[%c0, %c0_0] : memref<1x128xf32, #tpu.memory_space<vmem>>, vector<1x128xf32>
    %1 = arith.truncf %0 : vector<1x128xf32> to vector<1x128xbf16>
    %c0_1 = arith.constant 0 : index
    %c0_2 = arith.constant 0 : index
    %2 = vector.load %arg2[%c0_1, %c0_2] : memref<1x128xf32, #tpu.memory_space<vmem>>, vector<1x128xf32>
    %3 = arith.truncf %2 : vector<1x128xf32> to vector<1x128xbf16>
    %c0_3 = arith.constant 0 : index
    %c0_4 = arith.constant 0 : index
    %4 = vector.load %arg3[%c0_3, %c0_4] : memref<128x256xbf16, #tpu.memory_space<vmem>>, vector<128x256xbf16>
    %cst = arith.constant dense<0.000000e+00> : vector<1x256xf32>
    %5 = tpu.matmul %1, %4, %cst {dimension_numbers = #tpu.dot_dimension_numbers<[1], [0], [0], [1], [0, 0, 1, 1], [], []>} : vector<1x128xbf16>, vector<128x256xbf16>, vector<1x256xf32> -> vector<1x256xf32>
    %c0_5 = arith.constant 0 : index
    %c0_6 = arith.constant 0 : index
    %6 = vector.load %arg4[%c0_5, %c0_6] : memref<128x256xbf16, #tpu.memory_space<vmem>>, vector<128x256xbf16>
    %cst_7 = arith.constant dense<0.000000e+00> : vector<1x256xf32>
    %7 = tpu.matmul %3, %6, %cst_7 {dimension_numbers = #tpu.dot_dimension_numbers<[1], [0], [0], [1], [0, 0, 1, 1], [], []>} : vector<1x128xbf16>, vector<128x256xbf16>, vector<1x256xf32> -> vector<1x256xf32>
    %8 = arith.addf %5, %7 : vector<1x256xf32>
    %c0_8 = arith.constant 0 : index
    %c0_9 = arith.constant 0 : index
    %9 = vector.load %arg5[%c0_8, %c0_9] : memref<1x256xf32, #tpu.memory_space<vmem>>, vector<1x256xf32>
    %10 = arith.addf %8, %9 : vector<1x256xf32>
    %cst_10 = arith.constant 0.000000e+00 : f32
    %11 = vector.broadcast %cst_10 : f32 to vector<1x256xf32>
    %12 = arith.maximumf %10, %11 : vector<1x256xf32>
    %13 = arith.truncf %12 : vector<1x256xf32> to vector<1x256xbf16>
    %c0_11 = arith.constant 0 : index
    %c0_12 = arith.constant 0 : index
    %14 = vector.load %arg6[%c0_11, %c0_12] : memref<256x8xbf16, #tpu.memory_space<vmem>>, vector<256x8xbf16>
    %cst_13 = arith.constant dense<0.000000e+00> : vector<1x8xf32>
    %15 = tpu.matmul %13, %14, %cst_13 {dimension_numbers = #tpu.dot_dimension_numbers<[1], [0], [0], [1], [0, 0, 1, 1], [], []>} : vector<1x256xbf16>, vector<256x8xbf16>, vector<1x8xf32> -> vector<1x8xf32>
    %c0_14 = arith.constant 0 : index
    %c0_15 = arith.constant 0 : index
    %16 = vector.load %arg7[%c0_14, %c0_15] : memref<1x1xf32, #tpu.memory_space<vmem>>, vector<1x1xf32>
    %17 = vector.broadcast %16 : vector<1x1xf32> to vector<1x8xf32>
    %18 = arith.addf %15, %17 : vector<1x8xf32>
    %19 = arith.negf %18 : vector<1x8xf32>
    %20 = math.exp %19 : vector<1x8xf32>
    %cst_16 = arith.constant 1.000000e+00 : f32
    %21 = vector.broadcast %cst_16 : f32 to vector<1x8xf32>
    %22 = arith.addf %21, %20 : vector<1x8xf32>
    %23 = arith.divf %21, %22 : vector<1x8xf32>
    %c0_17 = arith.constant 0 : index
    %c0_18 = arith.constant 0 : index
    %24 = vector.load %arg8[%c0_17, %c0_18] : memref<1x8xf32, #tpu.memory_space<vmem>>, vector<1x8xf32>
    tpu.vector_store %arg8[%c0_17, %c0_18], %23 {strides = array<i32>} : memref<1x8xf32, #tpu.memory_space<vmem>>, vector<1x8xf32>,
    return
  }
  func.func @transform_0(%arg0: i32) -> (i32, i32) {
    %c0_i32 = arith.constant 0 : i32
    %c0_i32_0 = arith.constant 0 : i32
    return %arg0, %c0_i32 : i32, i32
  }
  func.func @transform_1(%arg0: i32) -> (i32, i32) {
    %c0_i32 = arith.constant 0 : i32
    %c0_i32_0 = arith.constant 0 : i32
    return %arg0, %c0_i32 : i32, i32
  }
  func.func @transform_2(%arg0: i32) -> (i32, i32) {
    %c0_i32 = arith.constant 0 : i32
    %c0_i32_0 = arith.constant 0 : i32
    %c0_i32_1 = arith.constant 0 : i32
    return %c0_i32, %c0_i32_0 : i32, i32
  }
  func.func @transform_3(%arg0: i32) -> (i32, i32) {
    %c0_i32 = arith.constant 0 : i32
    %c0_i32_0 = arith.constant 0 : i32
    %c0_i32_1 = arith.constant 0 : i32
    return %c0_i32, %c0_i32_0 : i32, i32
  }
  func.func @transform_4(%arg0: i32) -> (i32, i32) {
    %c0_i32 = arith.constant 0 : i32
    %c0_i32_0 = arith.constant 0 : i32
    %c0_i32_1 = arith.constant 0 : i32
    return %c0_i32, %c0_i32_0 : i32, i32
  }
  func.func @transform_5(%arg0: i32) -> (i32, i32) {
    %c0_i32 = arith.constant 0 : i32
    %c0_i32_0 = arith.constant 0 : i32
    %c0_i32_1 = arith.constant 0 : i32
    return %c0_i32, %c0_i32_0 : i32, i32
  }
  func.func @transform_6(%arg0: i32) -> (i32, i32) {
    %c0_i32 = arith.constant 0 : i32
    %c0_i32_0 = arith.constant 0 : i32
    %c0_i32_1 = arith.constant 0 : i32
    return %c0_i32, %c0_i32_0 : i32, i32
  }
  func.func @transform_7(%arg0: i32) -> (i32, i32) {
    %c0_i32 = arith.constant 0 : i32
    %c0_i32_0 = arith.constant 0 : i32
    return %arg0, %c0_i32 : i32, i32
  }
}

</mosaic_0001>

<bundles_post_ra>
// kernel: block_selection_forward.1
= control target key start
LH: loop header
LB: loop body
LE: loop exit
PB: predicated region body
PF: predicated region fallthrough
CT: control target
= control target key end

     0   :  { %s891_s0 = inlined_call_operand.vmem [shape: f32[1,128], index: 0, kind: input, shape index: {}]   ;;  %s892_s1 = inlined_call_operand.vmem [shape: f32[1,128], index: 1, kind: input, shape index: {}]   ;;  %s893_s2 = inlined_call_operand.vmem [shape: bf16[128,256], index: 2, kind: input, shape index: {}]   ;;  %s894_s3 = inlined_call_operand.vmem [shape: bf16[128,256], index: 3, kind: input, shape index: {}]   ;;  %s895_s4 = inlined_call_operand.vmem [shape: f32[1,256], index: 4, kind: input, shape index: {}]   ;;  %s896_s5 = inlined_call_operand.vmem [shape: bf16[256,8], index: 5, kind: input, shape index: {}]   ;;  %s897_s6 = inlined_call_operand.<no memory space> [shape: f32[1,1], index: 6, kind: input, shape index: {}]   ;;  %s898_s7 = inlined_call_operand.hbm [shape: f32[1,8], index: 7, kind: output, shape index: {}]  }
   0x1   :  { %v12_v0 = vstv %s897_s6 }
   0x2   :  { %13 = vst [vmem:[#allocation2] sm:$0x1] %v12_v0 }
   0x3   :  { %v600_v1 = vld [vmem:[%s894_s3 + $0x74] ss:$8 sps:$4 sm:$0xff]   ;;  %v690_v3 = vmov 0   ;;  %v604_v4 = vld [vmem:[%s894_s3 + $0x70] ss:$8 sps:$4 sm:$0xff]  }
   0x4   :  { %v602_v2 = vld [vmem:[%s893_s2 + $0x74] ss:$8 sps:$4 sm:$0xff]   ;;  %178 = vmatprep.mubr.bf16.mxu0 %v690_v3  ;;  %299 = vmatprep.mubr.bf16.mxu1 %v690_v3  ;;  %v605_v5 = vld [vmem:[%s893_s2 + $0x70] ss:$8 sps:$4 sm:$0xff]   ;;  %v606_v6 = vld [vmem:[%s894_s3 + $0x64] ss:$8 sps:$4 sm:$0xff]  }
   0x5   :  { %146 = vmatprep.subr.bf16.mxu0 %v600_v1  ;;  %599 = vset.pattern.permute.xlu0 %v690_v3  ;;  %v608_v7 = vld [vmem:[%s893_s2 + $0x64] ss:$8 sps:$4 sm:$0xff]   ;;  %v610_v8 = vld [vmem:[%s894_s3 + $0x60] ss:$8 sps:$4 sm:$0xff]   ;;  %v612_v10 = vld [vmem:[%s894_s3 + $0x54] ss:$8 sps:$4 sm:$0xff]  }
   0x6   :  { %267 = vmatprep.subr.bf16.mxu1 %v602_v2  ;;  %147 = vmatpush1.bf16.msra.mxu0 %v604_v4  ;;  %v611_v9 = vld [vmem:[%s893_s2 + $0x60] ss:$8 sps:$4 sm:$0xff]   ;;  %v614_v11 = vld [vmem:[%s893_s2 + $0x54] ss:$8 sps:$4 sm:$0xff]   ;;  %v616_v12 = vld [vmem:[%s894_s3 + $0x50] ss:$8 sps:$4 sm:$0xff]  }
   0x7   :  { %268 = vmatpush1.bf16.msra.mxu1 %v605_v5  ;;  %148 = vmatprep.subr.bf16.mxu0 %v606_v6  ;;  %v617_v13 = vld [vmem:[%s893_s2 + $0x50] ss:$8 sps:$4 sm:$0xff]   ;;  %v618_v14 = vld [vmem:[%s894_s3 + $0x44] ss:$8 sps:$4 sm:$0xff]   ;;  %v622_v16 = vld [vmem:[%s894_s3 + $0x40] ss:$8 sps:$4 sm:$0xff]  }
   0x8   :  { %269 = vmatprep.subr.bf16.mxu1 %v608_v7  ;;  %v620_v15 = vld [vmem:[%s893_s2 + $0x44] ss:$8 sps:$4 sm:$0xff]   ;;  %v623_v17 = vld [vmem:[%s893_s2 + $0x40] ss:$8 sps:$4 sm:$0xff]   ;;  %v624_v18 = vld [vmem:[%s894_s3 + $0x34] ss:$8 sps:$4 sm:$0xff]  }
   0x9   :  { %v626_v19 = vld [vmem:[%s893_s2 + $0x34] ss:$8 sps:$4 sm:$0xff]   ;;  %v628_v20 = vld [vmem:[%s894_s3 + $0x30] ss:$8 sps:$4 sm:$0xff]   ;;  %v630_v22 = vld [vmem:[%s894_s3 + $0x24] ss:$8 sps:$4 sm:$0xff]  }
   0xa   :  { %149 = vmatpush1.bf16.msra.mxu0 %v610_v8  ;;  %v629_v21 = vld [vmem:[%s893_s2 + $0x30] ss:$8 sps:$4 sm:$0xff]   ;;  %v632_v23 = vld [vmem:[%s893_s2 + $0x24] ss:$8 sps:$4 sm:$0xff]   ;;  %v634_v24 = vld [vmem:[%s894_s3 + $0x20] ss:$8 sps:$4 sm:$0xff]  }
   0xb   :  { %270 = vmatpush1.bf16.msra.mxu1 %v611_v9  ;;  %150 = vmatprep.subr.bf16.mxu0 %v612_v10  ;;  %v635_v25 = vld [vmem:[%s893_s2 + $0x20] ss:$8 sps:$4 sm:$0xff]   ;;  %v636_v26 = vld [vmem:[%s894_s3 + $0x14] ss:$8 sps:$4 sm:$0xff]   ;;  %v640_v28 = vld [vmem:[%s894_s3 + $0x10] ss:$8 sps:$4 sm:$0xff]  }
   0xc   :  { %271 = vmatprep.subr.bf16.mxu1 %v614_v11  ;;  %v638_v27 = vld [vmem:[%s893_s2 + $0x14] ss:$8 sps:$4 sm:$0xff]   ;;  %v641_v29 = vld [vmem:[%s893_s2 + $0x10] ss:$8 sps:$4 sm:$0xff]   ;;  %v642_v30 = vld [vmem:[%s894_s3 + $0x4] ss:$8 sps:$4 sm:$0xff]  }
   0xd   :  { %v644_v31 = vld [vmem:[%s893_s2 + $0x4] ss:$8 sps:$4 sm:$0xff]   ;;  %v646_v32 = vld [vmem:[%s894_s3] ss:$8 sps:$4 sm:$0xff]   ;;  %v648_v36 = vld [vmem:[%s896_s5 + $0x78] sm:$0xff]  }
   0xe   :  { %151 = vmatpush1.bf16.msra.mxu0 %v616_v12  ;;  %v647_v33 = vld [vmem:[%s893_s2] ss:$8 sps:$4 sm:$0xff]   ;;  %v649_v37 = vld [vmem:[%s896_s5 + $0x38] sm:$0xff]   ;;  %v650_v40 = vld [vmem:[%s896_s5 + $0x70] sm:$0xff]  }
   0xf   :  { %272 = vmatpush1.bf16.msra.mxu1 %v617_v13  ;;  %152 = vmatprep.subr.bf16.mxu0 %v618_v14  ;;  %v32_v34 = vld [vmem:[%s892_s1] sm:$0x1]  ;;  %v651_v41 = vld [vmem:[%s896_s5 + $0x30] sm:$0xff]  }
  0x10   :  { %273 = vmatprep.subr.bf16.mxu1 %v620_v15  ;;  %v30_v35 = vld [vmem:[%s891_s0] sm:$0x1]  ;;  %v33_v38 = vpack.c.bf16 %v32_v34, %v32_v34 }
  0x11   :  { %v31_v39 = vpack.c.bf16 %v30_v35, %v30_v35 }
  0x12   :  { %153 = vmatpush1.bf16.msra.mxu0 %v622_v16 }
  0x13   :  { %274 = vmatpush1.bf16.msra.mxu1 %v623_v17  ;;  %154 = vmatprep.subr.bf16.mxu0 %v624_v18 }
  0x14   :  { %275 = vmatprep.subr.bf16.mxu1 %v626_v19 }
  0x16   :  { %155 = vmatpush1.bf16.msra.mxu0 %v628_v20 }
  0x17   :  { %276 = vmatpush1.bf16.msra.mxu1 %v629_v21  ;;  %156 = vmatprep.subr.bf16.mxu0 %v630_v22 }
  0x18   :  { %277 = vmatprep.subr.bf16.mxu1 %v632_v23 }
  0x1a   :  { %157 = vmatpush1.bf16.msra.mxu0 %v634_v24 }
  0x1b   :  { %278 = vmatpush1.bf16.msra.mxu1 %v635_v25  ;;  %158 = vmatprep.subr.bf16.mxu0 %v636_v26 }
  0x1c   :  { %279 = vmatprep.subr.bf16.mxu1 %v638_v27 }
  0x1e   :  { %159 = vmatpush1.bf16.msra.mxu0 %v640_v28 }
  0x1f   :  { %280 = vmatpush1.bf16.msra.mxu1 %v641_v29  ;;  %160 = vmatprep.subr.bf16.mxu0 %v642_v30 }
  0x20   :  { %281 = vmatprep.subr.bf16.mxu1 %v644_v31 }
  0x22   :  { %161 = vmatpush1.bf16.msra.mxu0 %v646_v32 }
  0x23   :  { %282 = vmatpush1.bf16.msra.mxu1 %v647_v33  ;;  %575 = vmatprep.subr.bf16.mxu0 %v648_v36 }
  0x25   :  { %179 = vmatmul.mubr.bf16.vlgmr.msra.gmra.mxu0 %v33_v38 }
  0x26   :  { %300 = vmatmul.mubr.bf16.vlgmr.msra.gmra.mxu1 %v31_v39  ;;  %576 = vmatpush3.bf16.msra.mxu0 %v649_v37 }
  0x27   :  { %14 = vsyncpa [#allocation4], 0  ;;  %577 = vmatprep.subr.bf16.mxu0 %v650_v40  ;;  %v652_v42 = vld [vmem:[%s896_s5 + $0x68] sm:$0xff]   ;;  %v654_v44 = vld [vmem:[%s896_s5 + $0x60] sm:$0xff]   ;;  %v310_v55 = vlaneseq  ;;  %vm510_vm0 = vcmask 57344  }
  0x28   :  { %v653_v43 = vld [vmem:[%s896_s5 + $0x28] sm:$0xff]   ;;  %v655_v45 = vld [vmem:[%s896_s5 + $0x20] sm:$0xff]   ;;  %v656_v46 = vld [vmem:[%s896_s5 + $0x58] sm:$0xff]  }
  0x29   :  { %v657_v47 = vld [vmem:[%s896_s5 + $0x18] sm:$0xff]   ;;  %v658_v48 = vld [vmem:[%s896_s5 + $0x50] sm:$0xff]   ;;  %v660_v50 = vld [vmem:[%s896_s5 + $0x48] sm:$0xff]   ;;  %v311_v56 = vshrl.u32 %v310_v55, 7 }
  0x2a   :  { %578 = vmatpush3.bf16.msra.mxu0 %v651_v41  ;;  %v659_v49 = vld [vmem:[%s896_s5 + $0x10] sm:$0xff]   ;;  %v661_v51 = vld [vmem:[%s896_s5 + $0x8] sm:$0xff]   ;;  %v662_v52 = vld [vmem:[%s896_s5 + $0x40] sm:$0xff]  }
  0x2b   :  { %579 = vmatprep.subr.bf16.mxu0 %v652_v42  ;;  %v663_v53 = vld [vmem:[%s896_s5] sm:$0xff]   ;;  %v312_v57 = vsub.s32 0, %v311_v56  ;;  %v316_v59 = vsub.s32 1, %v311_v56 }
  0x2c   :  { %v358_v54 = vld [vmem:[#allocation2] sm:$0x1] }
  0x2d   :  { %361 = vperm.xlu0 %599, %v358_v54   ;;  %v308_v58 = vld [vmem:[%s895_s4] sm:$0x3]  ;;  %s691_s4 = smov [#allocation3]  }
  0x2e   :  { %580 = vmatpush3.bf16.msra.mxu0 %v653_v43  ;;  %v313_v60 = vrot.slane %v308_v58, %v312_v57  ;;  %v317_v0 = vrot.slane %v308_v58, %v316_v59  ;;  %s518_s5 = sshll.u32 %s691_s4, 4  ;;  %s519_s5 = int_to_ptr.vmem [resolvable:$true] %s518_s5 }
  0x2f   :  { %581 = vmatprep.subr.bf16.mxu0 %v654_v44  ;;  %s668_s0 = scalar_lea.vmem %s519_s5, 16  ;;  %s672_s25 = scalar_lea.vmem %s519_s5, 32 }
  0x30   :  { %p669_p0 = scmp.ne.s32.totalorder %s519_s5, %s668_s0  ;;  %p673_p1 = scmp.lt.s32.totalorder %s519_s5, %s519_s5 }
  0x31   :  { %p674_p2 = scmp.lt.s32.totalorder %s672_s25, %s668_s0 }
  0x32   :  { %582 = vmatpush3.bf16.msra.mxu0 %v655_v45 }
  0x33   :  { %583 = vmatprep.subr.bf16.mxu0 %v656_v46  ;;  %p675_p3 = por %p674_p2, %p673_p1 }
  0x35   :  { %p676_p4 = pnand %p675_p3, %p669_p0 }
  0x36   :  { %584 = vmatpush3.bf16.msra.mxu0 %v657_v47 }
  0x37   :  { %585 = vmatprep.subr.bf16.mxu0 %v658_v48 }
  0x3a   :  { %586 = vmatpush3.bf16.msra.mxu0 %v659_v49 }
  0x3b   :  { %587 = vmatprep.subr.bf16.mxu0 %v660_v50 }
  0x3e   :  { %588 = vmatpush3.bf16.msra.mxu0 %v661_v51 }
  0x3f   :  { %589 = vmatprep.subr.bf16.mxu0 %v662_v52 }
  0x42   :  { %590 = vmatpush3.bf16.msra.mxu0 %v663_v53 }
  0xa8   :  { %v362_v14 = vpop.permute.xlu0 %361 }
  0xa9   :  { %v367_v16 = vrot.slane %v362_v14, %v312_v57 }
  0xe5   :  { %v180_v61 = vpop.f32.mrf.mxu0 }
  0xe6   :  { %v301_v62 = vpop.f32.mrf.mxu1 }
  0xe7   :  { %v302_v63 = vadd.f32 %v301_v62, %v180_v61  ;;  %v182_v1 = vpop.f32.mrf.mxu0 }
  0xe8   :  { %v303_v2 = vpop.f32.mrf.mxu1 }
  0xe9   :  { %v320_v3 = vadd.f32 %v313_v60, %v302_v63  ;;  %v304_v4 = vadd.f32 %v303_v2, %v182_v1  ;;  %v184_v5 = vpop.f32.mrf.mxu0 }
  0xea   :  { %v305_v6 = vpop.f32.mrf.mxu1 }
  0xeb   :  { %v321_v7 = vadd.f32 %v317_v0, %v304_v4  ;;  %v322_v8 = vmax.f32 %v320_v3, 0.0  ;;  %v185_v9 = vpop.f32.mrf.mxu0 }
  0xec   :  { %v306_v10 = vpop.f32.mrf.mxu1 }
  0xed   :  { %v323_v11 = vmax.f32 %v321_v7, 0.0  ;;  %v324_v13 = vpack.c.bf16 %v322_v8, %v322_v8 }
  0xef   :  { %v325_v12 = vpack.c.bf16 %v323_v11, %v323_v11 }
  0xf1   :  { %496 = vmatprep.mubr.bf16.mxu0 %v325_v12 }
  0xf2   :  { %497 = vmatmul.mubr.bf16.vlgmr.msra.gmra.mxu0 %v324_v13 }
 0x1b2   :  { %v591_v15 = vpop.f32.mrf.mxu0 }
 0x1b4   :  { %v592_v17 = vpop.f32.mrf.mxu0 }
 0x1b5   :  { %v593_v18 = vadd.f32 %v592_v17, %v591_v15 }
 0x1b6   :  { %v594_v19 = vpop.f32.mrf.mxu0 }
 0x1b7   :  { %v499_v20 = vadd.f32 %v593_v18, %v367_v16 }
 0x1b8   :  { %v595_v21 = vpop.f32.mrf.mxu0 }
 0x1b9   :  { %v574_v22 = vmul.f32 -1.442695, %v499_v20 }
 0x1bb   :  { %664 = vpow2.f32 %v574_v22 }
 0x1c8   :  { %v665_v23 = vpop.eup %664 }
 0x1c9   :  { %v507_v24 = vadd.f32 1.0, %v665_v23 }
 0x1cb   :  { %666 = vrcp.f32 %v507_v24 }
 0x1d8   :  { %v667_v25 = vpop.eup %666 }
 0x1d9   :  { %511 = vst.msk [vmem:[#allocation3] sm:$0x1] %vm510_vm0, %v667_v25 }
 0x1da   :  { %679 = shalt.err (!%p676_p4)
}
 0x1db   :  { %521 = dma.vmem_to_hbm [thread:$0]  %s519_s5, 16, %s898_s7, [#allocation4]  }
 0x1dc   :  { %688 = dma.done.wait [#allocation4], 16  }
 0x1dd   :  { %689 = vsyncadd [#allocation4], 4294967280 }
 0x1de   :  { %525 = vsyncpa [#allocation4], 1 }

</bundles_post_ra>
